<compile_context>
chip_gen: v7x
topology: tpu7x:2x2x1
jax: 0.10.0
libtpu: 0.0.40
codegen_flags: <defaults>
</compile_context>

<pallas_src>
import functools
import math

import jax
import jax.numpy as jnp
from jax.experimental import pallas as pl
from jax.experimental.pallas import tpu as pltpu


def _round_up(x, m):
    return ((x + m - 1) // m) * m


def _round_down(x, m):
    return (x // m) * m


@functools.lru_cache(maxsize=None)
def _tpu_params():
    """Return (vmem_limit_bytes, per_buffer_budget_bytes, num_tensorcores)."""
    vmem_cap = None
    try:
        vmem_cap = int(pltpu.get_tpu_info().vmem_capacity_bytes)
    except Exception:
        vmem_cap = None
    if not vmem_cap or vmem_cap <= 0:
        vmem_cap = 64 * 1024 * 1024            # conservative (v7x-sized) fallback

    if vmem_cap >= 128 * 1024 * 1024:          # v5e / v6e class parts (128 MiB)
        vmem_limit = 64 * 1024 * 1024
        buf_budget = 12 * 1024 * 1024
    else:                                      # v7x class parts (64 MiB)
        vmem_limit = min(48 * 1024 * 1024, (vmem_cap * 3) // 4)
        buf_budget = 8 * 1024 * 1024

    cores = 1
    try:
        kind = str(getattr(jax.devices()[0], "device_kind", "")).lower()
        # chips with 2 TensorCores behind one device (megacore-style sharding)
        if any(tag in kind for tag in ("v4", "v5p", "tpu7", "v7", "7x")):
            cores = 2
    except Exception:
        cores = 1
    return vmem_limit, buf_budget, cores


def _make_matvec_kernel(*, tiled_k, mask_k, k_valid, tk, precision):
    """Build the kernel body (Python-static specialization)."""
    if not tiled_k:
        def kernel(a_ref, w_ref, o_ref):
            # Single K block: one MXU dot per batch tile.
            o_ref[...] = jnp.dot(a_ref[...], w_ref[...],
                                 preferred_element_type=jnp.float32,
                                 precision=precision)
        return kernel

    def kernel(a_ref, w_ref, o_ref, acc_ref):
        k = pl.program_id(1)

        @pl.when(k == 0)
        def _init():
            acc_ref[...] = jnp.zeros_like(acc_ref)

        a = a_ref[...]
        if mask_k:
            # Zero the out-of-bounds tail columns of the last K block so stale
            # VMEM (possibly NaN) never reaches the accumulator; W's matching
            # rows are exact zeros.
            col = jax.lax.broadcasted_iota(jnp.int32, a.shape, 1) + k * tk
            a = jnp.where(col < k_valid, a, 0.0)

        acc_ref[...] += jnp.dot(a, w_ref[...],
                                preferred_element_type=jnp.float32,
                                precision=precision)

        @pl.when(k == pl.num_programs(1) - 1)
        def _finalize():
            o_ref[...] = acc_ref[...]

    return kernel


@functools.partial(jax.jit, static_argnames=("precision", "tile_budget_bytes"))
def linear_forward(A, x_outer, *, precision=jax.lax.Precision.HIGHEST,
                   tile_budget_bytes=None):
    """Pallas equivalent of `torch.matmul(A, x_outer)` for A of shape (..., d).

    precision defaults to HIGHEST: the kernel is memory-bound for all shapes
    we fold to (f <= 16 -> <= ~48 MXU-pass flops/byte, well under the HBM
    roofline even on v5e), so the extra MXU passes hide under the A-tile DMA
    while preserving f32-grade accuracy vs the torch reference.
    """
    A = jnp.asarray(A, jnp.float32)
    x_outer = jnp.asarray(x_outer, jnp.float32)
    d = int(x_outer.shape[0])
    assert A.shape[-1] == d

    lead_shape = A.shape[:-1]
    B = math.prod(int(s) for s in lead_shape) if lead_shape else 1
    if B == 0:
        return jnp.zeros(lead_shape, jnp.float32)
    A2 = A.reshape(B, d)

    vmem_limit, buf_budget, n_cores = _tpu_params()
    if tile_budget_bytes is not None:
        buf_budget = int(tile_budget_bytes)

    # ---- Row fold: f rows per lane-dense folded row. ------------------------
    # Target f = 128 // gcd(d,128) so K = f*d is a lane multiple; cap to bound
    # MXU inflation / W size; restrict to a divisor of B so A is never padded.
    f_target = min(128 // math.gcd(d, 128), 16)
    f = math.gcd(f_target, B)
    K = f * d
    M = B // f
    A_f = A2.reshape(M, K) if f > 1 else A2          # contiguous, copy-free

    # Block-diagonal weight: W[j*d + k, j] = x[k]  =>  (A_f @ W).reshape(B) == A @ x.
    if f == 1:
        W = x_outer.reshape(d, 1)
    else:
        W = (jnp.eye(f, dtype=jnp.float32)[:, None, :]
             * x_outer[None, :, None]).reshape(K, f)

    # ---- Batch (M) tile ------------------------------------------------------
    if M < 8:
        tm = M                                        # block == full dim (legal)
    else:
        tm = min(1024, _round_down(M, 8))             # largest 8-multiple <= M
    if n_cores > 1:
        # >= 2 grid steps per TensorCore so each core's pipeline overlaps DMA.
        tm = min(tm, max(256, _round_up(pl.cdiv(M, 2 * n_cores), 8)))

    # ---- K tile (reduction axis) --------------------------------------------
    # Per-K-row bytes of double-buffered VMEM: A-tile column + lane-padded W row.
    bytes_per_k_row = 4 * (tm + 128)
    if K <= 512 or bytes_per_k_row * K <= buf_budget:
        tk, nk, mask_k = K, 1, False
    else:
        tk = max(512, _round_down(buf_budget // bytes_per_k_row, 128))
        tk = min(tk, _round_down(K, 128))
        if K % tk:
            # Prefer an exact 128-multiple divisor of K near the target so the
            # tail mask is not needed at all.
            for cand in range(tk - 128, max(128, tk // 2) - 1, -128):
                if K % cand == 0:
                    tk = cand
                    break
        nk = pl.cdiv(K, tk)
        mask_k = (K % tk) != 0

    K_pad = nk * tk
    if K_pad != K:
        # Only W (tiny) is ever padded; its tail rows are exact zeros.
        W = jnp.pad(W, ((0, K_pad - K), (0, 0)))

    nm = pl.cdiv(M, tm)
    kernel = _make_matvec_kernel(tiled_k=(nk > 1), mask_k=mask_k, k_valid=K,
                                 tk=tk, precision=precision)
    cost = pl.CostEstimate(flops=2 * M * K * f, transcendentals=0,
                           bytes_accessed=4 * (M * K + K_pad * f + M * f))

    if nk == 1:
        grid = (nm,)
        in_specs = [pl.BlockSpec((tm, K), lambda i: (i, 0)),    # streamed A tiles
                    pl.BlockSpec((K, f), lambda i: (0, 0))]     # W (resident)
        out_spec = pl.BlockSpec((tm, f), lambda i: (i, 0))
        scratch = ()
        dims = ("parallel",)
    else:
        grid = (nm, nk)                                          # reduction last
        in_specs = [pl.BlockSpec((tm, tk), lambda i, k: (i, k)),
                    pl.BlockSpec((tk, f), lambda i, k: (k, 0))]
        out_spec = pl.BlockSpec((tm, f), lambda i, k: (i, 0))
        scratch = (pltpu.VMEM((tm, f), jnp.float32),)            # f32 accumulator
        dims = ("parallel", "arbitrary")

    out = pl.pallas_call(
        kernel,
        out_shape=jax.ShapeDtypeStruct((M, f), jnp.float32),
        grid_spec=pltpu.PrefetchScalarGridSpec(
            num_scalar_prefetch=0,
            grid=grid,
            in_specs=in_specs,
            out_specs=out_spec,
            scratch_shapes=scratch,
        ),
        compiler_params=pltpu.CompilerParams(
            dimension_semantics=dims,
            vmem_limit_bytes=int(vmem_limit),
        ),
        cost_estimate=cost,
    )(A_f, W)

    # M*f == B exactly (f divides B), so this is a pure copy-free reshape.
    return out.reshape(lead_shape)


class LinearPallas:
    """Deterministic re-creation of the PyTorch module's parameters."""

    def __init__(self, d, n):
        # Matches torch.ones(...) * 10 initialization.
        self.y_inner = jnp.ones((n,), dtype=jnp.float32) * 10.0   # unused in forward
        self.x_outer = jnp.ones((d,), dtype=jnp.float32) * 10.0

    def __call__(self, A):
        return linear_forward(A, self.x_outer)


if __name__ == "__main__":
    key = jax.random.PRNGKey(0)
    k1, k2, k3 = jax.random.split(key, 3)

    # 1) Small shape consistent with the module's forward: A is (batch, d).
    d, n, B = 32, 16, 16
    A = jax.random.normal(k1, (B, d), dtype=jnp.float32)
    model = LinearPallas(d, n)
    out = jax.block_until_ready(model(A))
    ref = jnp.sum(A * model.x_outer[None, :], axis=-1)
    assert out.shape == (B,)
    assert jnp.allclose(out, ref, rtol=1e-3, atol=1e-3)

    # 2) Non-divisible batch, d >= 128 (no fold), multi-step grid with a
    #    partial tail block — no padding copies anywhere.
    B2, d2 = 1000, 256
    A2 = jax.random.normal(k2, (B2, d2), dtype=jnp.float32)
    x2 = jnp.ones((d2,), dtype=jnp.float32) * 10.0
    out2 = jax.block_until_ready(linear_forward(A2, x2))
    ref2 = jnp.sum(A2 * x2[None, :], axis=-1)
    assert out2.shape == (B2,)
    assert jnp.allclose(out2, ref2, rtol=1e-3, atol=1e-3)

    # 3) Force the K-tiled accumulator path (small VMEM budget override):
    #    exercises the 2-D grid, the f32 scratch accumulator and the tail mask.
    B3, d3 = 64, 640
    A3 = jax.random.normal(k3, (B3, d3), dtype=jnp.float32)
    x3 = jnp.ones((d3,), dtype=jnp.float32) * 10.0
    out3 = jax.block_until_ready(
        linear_forward(A3, x3, tile_budget_bytes=64 * 1024))
    ref3 = jnp.sum(A3 * x3[None, :], axis=-1)
    assert out3.shape == (B3,)
    assert jnp.allclose(out3, ref3, rtol=1e-3, atol=1e-3)

    print("KERNEL_OK")
</pallas_src>

<mosaic_0001>
module attributes {stable_mosaic.version = 11 : i64} {
  func.func @kernel(%arg0: i32, %arg1: memref<4x128xf32, #tpu.memory_space<vmem>>, %arg2: memref<128x4xf32, #tpu.memory_space<vmem>>, %arg3: memref<4x4xf32, #tpu.memory_space<vmem>>) attributes {dimension_semantics = [#tpu.dimension_semantics<parallel>], iteration_bounds = array<i64: 1>, scalar_prefetch = 0 : i64, scratch_operands = 0 : i64, tpu.core_type = #tpu.core_type<tc>, window_params = [{transform_indices = @transform_0, window_bounds = array<i64: 4, 128>}, {pipeline_mode = #tpu.pipeline_mode<synchronous>, transform_indices = @transform_1, window_bounds = array<i64: 128, 4>}, {transform_indices = @transform_2, window_bounds = array<i64: 4, 4>}]} {
    %c0 = arith.constant 0 : index
    %c0_0 = arith.constant 0 : index
    %0 = vector.load %arg1[%c0, %c0_0] : memref<4x128xf32, #tpu.memory_space<vmem>>, vector<4x128xf32>
    %c0_1 = arith.constant 0 : index
    %c0_2 = arith.constant 0 : index
    %1 = vector.load %arg2[%c0_1, %c0_2] : memref<128x4xf32, #tpu.memory_space<vmem>>, vector<128x4xf32>
    %cst = arith.constant dense<0.000000e+00> : vector<4x4xf32>
    %2 = tpu.matmul %0, %1, %cst {dimension_numbers = #tpu.dot_dimension_numbers<[1], [0], [0], [1], [0, 0, 1, 1], [], []>, precision = #tpu.contract_precision<fp32>} : vector<4x128xf32>, vector<128x4xf32>, vector<4x4xf32> -> vector<4x4xf32>
    %c0_3 = arith.constant 0 : index
    %c0_4 = arith.constant 0 : index
    %3 = vector.load %arg3[%c0_3, %c0_4] : memref<4x4xf32, #tpu.memory_space<vmem>>, vector<4x4xf32>
    tpu.vector_store %arg3[%c0_3, %c0_4], %2 {strides = array<i32>} : memref<4x4xf32, #tpu.memory_space<vmem>>, vector<4x4xf32>,
    return
  }
  func.func @transform_0(%arg0: i32) -> (i32, i32) {
    %c0_i32 = arith.constant 0 : i32
    %c0_i32_0 = arith.constant 0 : i32
    return %arg0, %c0_i32 : i32, i32
  }
  func.func @transform_1(%arg0: i32) -> (i32, i32) {
    %c0_i32 = arith.constant 0 : i32
    %c0_i32_0 = arith.constant 0 : i32
    %c0_i32_1 = arith.constant 0 : i32
    return %c0_i32, %c0_i32_0 : i32, i32
  }
  func.func @transform_2(%arg0: i32) -> (i32, i32) {
    %c0_i32 = arith.constant 0 : i32
    %c0_i32_0 = arith.constant 0 : i32
    return %arg0, %c0_i32 : i32, i32
  }
}

</mosaic_0001>

<bundles_post_ra>
// kernel: linear_forward.1
= control target key start
LH: loop header
LB: loop body
LE: loop exit
PB: predicated region body
PF: predicated region fallthrough
CT: control target
= control target key end

     0   :  { %v1143_v0 = vmov 0.0|0.0   ;;  %vm1144_vm0 = vmmov 0   ;;  %v1145_v8 = vmov 0.0   ;;  %vm669_vm1 = vcmask 27648   ;;  %s1462_s1 = inlined_call_operand.vmem [shape: f32[128,4], index: 1, kind: input, shape index: {}]   ;;  %s1463_s0 = inlined_call_operand.vmem [shape: f32[4,128], index: 0, kind: input, shape index: {}]   ;;  %s1464_s2 = inlined_call_operand.vmem [shape: f32[4,4], index: 2, kind: output, shape index: {}]  }
   0x1   :  { %987 = vmatprep.subr.bf16.mxu1 %v1143_v0  ;;  %1059 = vmatprep.subr.bf16.mxu0 %v1143_v0  ;;  %v12_v1 = vld [vmem:[%s1462_s1] sm:$0xff]  ;;  %v13_v2 = vld [vmem:[%s1462_s1 + $0x8] sm:$0xff]  ;;  %v14_v3 = vld [vmem:[%s1462_s1 + $0x10] sm:$0xff] }
   0x2   :  { %v29_v4 = vand.u32 4294901760, %v12_v1  ;;  %v32_v5 = vand.u32 4294901760, %v13_v2  ;;  %v15_v6 = vld [vmem:[%s1462_s1 + $0x18] sm:$0xff]  ;;  %v35_v7 = vand.u32 4294901760, %v14_v3  ;;  %809 = vmatprep.mubr.msk.f32.mxu1 %vm1144_vm0, %v1145_v8  ;;  %914 = vmatprep.mubr.msk.f32.mxu0 %vm1144_vm0, %v1145_v8  ;;  %v16_v10 = vld [vmem:[%s1462_s1 + $0x20] sm:$0xff]  ;;  %v17_v11 = vld [vmem:[%s1462_s1 + $0x28] sm:$0xff] }
   0x3   :  { %v38_v9 = vand.u32 4294901760, %v15_v6  ;;  %v41_v14 = vand.u32 4294901760, %v16_v10  ;;  %v44_v15 = vand.u32 4294901760, %v17_v11  ;;  %v18_v16 = vld [vmem:[%s1462_s1 + $0x30] sm:$0xff]  ;;  %v19_v17 = vld [vmem:[%s1462_s1 + $0x38] sm:$0xff]  ;;  %v1208_v21 = vld [vmem:[%s1462_s1 + $0x40] sm:$0xff] }
   0x4   :  { %v1185_v12 = vpack.c.bf16 %v32_v5, %v29_v4  ;;  %v47_v19 = vand.u32 4294901760, %v18_v16  ;;  %v50_v20 = vand.u32 4294901760, %v19_v17  ;;  %v1213_v22 = vld [vmem:[%s1462_s1 + $0x48] sm:$0xff]  ;;  %v53_v24 = vand.u32 4294901760, %v1208_v21  ;;  %v11_v26 = vld [vmem:[%s1463_s0] sm:$0xf] }
   0x5   :  { %v1189_v13 = vpack.c.bf16 %v38_v9, %v35_v7  ;;  %v1201_v18 = vpack.c.bf16 %v44_v15, %v41_v14  ;;  %v56_v25 = vand.u32 4294901760, %v1213_v22  ;;  %v1229_v27 = vld [vmem:[%s1462_s1 + $0x50] sm:$0xff]  ;;  %v1234_v28 = vld [vmem:[%s1462_s1 + $0x58] sm:$0xff]  ;;  %v1236_v29 = vsub.f32 %v12_v1, %v29_v4  ;;  %v1251_v35 = vld [vmem:[%s1462_s1 + $0x60] sm:$0xff] }
   0x6   :  { %989 = vmatpush3.bf16.msra.mxu1 %v1185_v12  ;;  %1061 = vmatpush3.bf16.msra.mxu0 %v1185_v12  ;;  %v1217_v23 = vpack.c.bf16 %v50_v20, %v47_v19  ;;  %v1238_v30 = vand.u32 4294901760, %v11_v26  ;;  %v1240_v31 = vsub.f32 %v13_v2, %v32_v5  ;;  %v59_v33 = vand.u32 4294901760, %v1229_v27  ;;  %v1258_v36 = vld [vmem:[%s1462_s1 + $0x68] sm:$0xff]  ;;  %v1280_v43 = vld [vmem:[%s1462_s1 + $0x70] sm:$0xff]  ;;  %v1285_v44 = vld [vmem:[%s1462_s1 + $0x78] sm:$0xff] }
   0x7   :  { %990 = vmatprep.subr.bf16.mxu1 %v1143_v0  ;;  %1062 = vmatprep.subr.bf16.mxu0 %v1143_v0  ;;  %v1244_v32 = vpack.c.bf16 %v56_v25, %v53_v24  ;;  %v62_v34 = vand.u32 4294901760, %v1234_v28  ;;  %v1260_v37 = vsub.f32 %v14_v3, %v35_v7  ;;  %v1262_v38 = vsub.f32 %v15_v6, %v38_v9 }
   0x8   :  { %v65_v39 = vand.u32 4294901760, %v1251_v35  ;;  %v1266_v40 = vsub.f32 %v11_v26, %v1238_v30  ;;  %v68_v42 = vand.u32 4294901760, %v1258_v36  ;;  %v122_v45 = vand.u32 4294901760, %v1236_v29 }
   0x9   :  { %v1274_v41 = vpack.c.bf16 %v62_v34, %v59_v33  ;;  %v129_v46 = vand.u32 4294901760, %v1240_v31  ;;  %v1291_v47 = vsub.f32 %v16_v10, %v41_v14  ;;  %v1293_v48 = vsub.f32 %v17_v11, %v44_v15 }
   0xa   :  { %992 = vmatpush3.bf16.msra.mxu1 %v1189_v13  ;;  %1064 = vmatpush3.bf16.msra.mxu0 %v1189_v13  ;;  %v71_v49 = vand.u32 4294901760, %v1280_v43  ;;  %v74_v50 = vand.u32 4294901760, %v1285_v44  ;;  %v111_v51 = vand.u32 4294901760, %v1266_v40  ;;  %v136_v52 = vand.u32 4294901760, %v1260_v37 }
   0xb   :  { %993 = vmatprep.subr.bf16.mxu1 %v1143_v0  ;;  %1065 = vmatprep.subr.bf16.mxu0 %v1143_v0  ;;  %v1305_v53 = vpack.c.bf16 %v68_v42, %v65_v39  ;;  %v123_v54 = vsub.f32 %v1236_v29, %v122_v45  ;;  %v130_v55 = vsub.f32 %v1240_v31, %v129_v46  ;;  %v143_v56 = vand.u32 4294901760, %v1262_v38 }
   0xc   :  { %v1312_v57 = vsub.f32 %v18_v16, %v47_v19  ;;  %v1314_v58 = vsub.f32 %v19_v17, %v50_v20  ;;  %v112_v59 = vsub.f32 %v1266_v40, %v111_v51  ;;  %v137_v60 = vsub.f32 %v1260_v37, %v136_v52 }
   0xd   :  { %v150_v61 = vand.u32 4294901760, %v1291_v47  ;;  %v157_v62 = vand.u32 4294901760, %v1293_v48  ;;  %v1326_v63 = vpack.c.bf16 %v74_v50, %v71_v49  ;;  %v124_v1 = vand.u32 4294901760, %v123_v54 }
   0xe   :  { %995 = vmatpush3.bf16.msra.mxu1 %v1201_v18  ;;  %1067 = vmatpush3.bf16.msra.mxu0 %v1201_v18  ;;  %v131_v2 = vand.u32 4294901760, %v130_v55  ;;  %v144_v3 = vsub.f32 %v1262_v38, %v143_v56  ;;  %v1332_v4 = vsub.f32 %v1208_v21, %v53_v24  ;;  %v1335_v5 = vsub.f32 %v1213_v22, %v56_v25 }
   0xf   :  { %996 = vmatprep.subr.bf16.mxu1 %v1143_v0  ;;  %1068 = vmatprep.subr.bf16.mxu0 %v1143_v0  ;;  %v1084_v6 = vpack.c.bf16 %v129_v46, %v122_v45  ;;  %v113_v7 = vand.u32 4294901760, %v112_v59  ;;  %v138_v9 = vand.u32 4294901760, %v137_v60  ;;  %v151_v10 = vsub.f32 %v1291_v47, %v150_v61 }
  0x10   :  { %v158_v11 = vsub.f32 %v1293_v48, %v157_v62  ;;  %v1012_v14 = vpack.c.bf16 %v131_v2, %v124_v1  ;;  %v145_v15 = vand.u32 4294901760, %v144_v3  ;;  %v164_v16 = vand.u32 4294901760, %v1312_v57 }
  0x11   :  { %v171_v17 = vand.u32 4294901760, %v1314_v58  ;;  %v1348_v19 = vsub.f32 %v1229_v27, %v59_v33  ;;  %v1353_v20 = vsub.f32 %v1234_v28, %v62_v34  ;;  %v1087_v21 = vpack.c.bf16 %v143_v56, %v136_v52 }
  0x12   :  { %998 = vmatpush3.bf16.msra.mxu1 %v1217_v23  ;;  %1070 = vmatpush3.bf16.msra.mxu0 %v1217_v23  ;;  %v152_v22 = vand.u32 4294901760, %v151_v10  ;;  %v159_v24 = vand.u32 4294901760, %v158_v11  ;;  %v178_v25 = vand.u32 4294901760, %v1332_v4  ;;  %v1015_v26 = vpack.c.bf16 %v145_v15, %v138_v9 }
  0x13   :  { %999 = vmatprep.subr.bf16.mxu1 %v1143_v0  ;;  %1071 = vmatprep.subr.bf16.mxu0 %v1143_v0  ;;  %v165_v45 = vsub.f32 %v1312_v57, %v164_v16  ;;  %v172_v27 = vsub.f32 %v1314_v58, %v171_v17  ;;  %v185_v33 = vand.u32 4294901760, %v1335_v5  ;;  %v1364_v28 = vsub.f32 %v1251_v35, %v65_v39 }
  0x14   :  { %v1369_v34 = vsub.f32 %v1258_v36, %v68_v42  ;;  %v1018_v46 = vpack.c.bf16 %v159_v24, %v152_v22  ;;  %v179_v52 = vsub.f32 %v1332_v4, %v178_v25  ;;  %v192_v54 = vand.u32 4294901760, %v1348_v19 }
  0x15   :  { %v166_v35 = vand.u32 4294901760, %v165_v45  ;;  %v173_v39 = vand.u32 4294901760, %v172_v27  ;;  %v186_v55 = vsub.f32 %v1335_v5, %v185_v33  ;;  %v199_v36 = vand.u32 4294901760, %v1353_v20 }
  0x16   :  { %1001 = vmatpush3.bf16.msra.mxu1 %v1244_v32  ;;  %1073 = vmatpush3.bf16.msra.mxu0 %v1244_v32  ;;  %v1384_v42 = vsub.f32 %v1280_v43, %v71_v49  ;;  %v1389_v56 = vsub.f32 %v1285_v44, %v74_v50  ;;  %v1093_v59 = vpack.c.bf16 %v171_v17, %v164_v16  ;;  %v180_v60 = vand.u32 4294901760, %v179_v52 }
  0x17   :  { %1002 = vmatprep.subr.bf16.mxu1 %v1143_v0  ;;  %1074 = vmatprep.subr.bf16.mxu0 %v1143_v0  ;;  %v1021_v1 = vpack.c.bf16 %v173_v39, %v166_v35  ;;  %v187_v2 = vand.u32 4294901760, %v186_v55  ;;  %v200_v3 = vsub.f32 %v1353_v20, %v199_v36  ;;  %v213_v43 = vand.u32 4294901760, %v1369_v34 }
  0x18   :  { %v1096_v44 = vpack.c.bf16 %v185_v33, %v178_v25  ;;  %v227_v11 = vand.u32 4294901760, %v1389_v56 }
  0x19   :  { %v201_v9 = vand.u32 4294901760, %v200_v3  ;;  %v214_v10 = vsub.f32 %v1369_v34, %v213_v43 }
  0x1a   :  { %1004 = vmatpush3.bf16.msra.mxu1 %v1274_v41  ;;  %1076 = vmatpush3.bf16.msra.mxu0 %v1274_v41  ;;  %v228_v22 = vsub.f32 %v1389_v56, %v227_v11 }
  0x1b   :  { %1005 = vmatprep.subr.bf16.mxu1 %v1143_v0  ;;  %1077 = vmatprep.subr.bf16.mxu0 %v1143_v0  ;;  %v215_v17 = vand.u32 4294901760, %v214_v10 }
  0x1c   :  { %v229_v45 = vand.u32 4294901760, %v228_v22 }
  0x1e   :  { %1007 = vmatpush3.bf16.msra.mxu1 %v1305_v53  ;;  %1079 = vmatpush3.bf16.msra.mxu0 %v1305_v53 }
  0x1f   :  { %1008 = vmatprep.subr.bf16.mxu1 %v1143_v0  ;;  %1080 = vmatprep.subr.bf16.mxu0 %v1143_v0 }
  0x22   :  { %1010 = vmatpush3.bf16.msra.mxu1 %v1326_v63  ;;  %1082 = vmatpush3.bf16.msra.mxu0 %v1326_v63 }
  0x23   :  { %1011 = vmatprep.subr.bf16.mxu1 %v1143_v0  ;;  %1083 = vmatprep.subr.bf16.mxu0 %v1143_v0 }
  0x25   :  { %810 = vmatmul.mubr.f32.vlgmr.msra.gmra.mrb[0].mxu1 %v113_v7  ;;  %915 = vmatmul.mubr.f32.vlgmr.msra.gmra.mrb[0].mxu0 %v111_v51  ;;  %v1090_v51 = vpack.c.bf16 %v157_v62, %v150_v61  ;;  %v193_v61 = vsub.f32 %v1348_v19, %v192_v54  ;;  %v206_v62 = vand.u32 4294901760, %v1364_v28  ;;  %v1024_v7 = vpack.c.bf16 %v187_v2, %v180_v60 }
  0x26   :  { %1013 = vmatpush3.bf16.msra.mxu1 %v1012_v14  ;;  %1085 = vmatpush3.bf16.msra.mxu0 %v1084_v6  ;;  %v220_v6 = vand.u32 4294901760, %v1384_v42  ;;  %v1099_v14 = vpack.c.bf16 %v199_v36, %v192_v54 }
  0x27   :  { %1014 = vmatprep.subr.bf16.mxu1 %v1143_v0  ;;  %1086 = vmatprep.subr.bf16.mxu0 %v1143_v0  ;;  %v194_v49 = vand.u32 4294901760, %v193_v61  ;;  %v207_v50 = vsub.f32 %v1364_v28, %v206_v62  ;;  %v1102_v25 = vpack.c.bf16 %v213_v43, %v206_v62 }
  0x28   :  { %844 = vmatprep.mubr.msk.f32.mxu1 %vm1144_vm0, %v1145_v8  ;;  %949 = vmatprep.mubr.msk.f32.mxu0 %vm1144_vm0, %v1145_v8  ;;  %v1105_v33 = vpack.c.bf16 %v227_v11, %v220_v6 }
  0x29   :  { %v208_v15 = vand.u32 4294901760, %v207_v50  ;;  %v1027_v16 = vpack.c.bf16 %v201_v9, %v194_v49 }
  0x2a   :  { %1016 = vmatpush3.bf16.msra.mxu1 %v1015_v26  ;;  %1088 = vmatpush3.bf16.msra.mxu0 %v1087_v21  ;;  %v221_v21 = vsub.f32 %v1384_v42, %v220_v6 }
  0x2b   :  { %1017 = vmatprep.subr.bf16.mxu1 %v1143_v0  ;;  %1089 = vmatprep.subr.bf16.mxu0 %v1143_v0  ;;  %v1030_v24 = vpack.c.bf16 %v215_v17, %v208_v15 }
  0x2c   :  { %v222_v26 = vand.u32 4294901760, %v221_v21 }
  0x2e   :  { %1019 = vmatpush3.bf16.msra.mxu1 %v1018_v46  ;;  %1091 = vmatpush3.bf16.msra.mxu0 %v1090_v51  ;;  %v1033_v27 = vpack.c.bf16 %v229_v45, %v222_v26  ;;  %v1036_v46 = vpack.c.bf16 %v1240_v31, %v1236_v29  ;;  %v1039_v51 = vpack.c.bf16 %v1262_v38, %v1260_v37 }
  0x2f   :  { %1020 = vmatprep.subr.bf16.mxu1 %v1143_v0  ;;  %1092 = vmatprep.subr.bf16.mxu0 %v1143_v0  ;;  %v1042_v29 = vpack.c.bf16 %v1293_v48, %v1291_v47 }
  0x32   :  { %1022 = vmatpush3.bf16.msra.mxu1 %v1021_v1  ;;  %1094 = vmatpush3.bf16.msra.mxu0 %v1093_v59 }
  0x33   :  { %1023 = vmatprep.subr.bf16.mxu1 %v1143_v0  ;;  %1095 = vmatprep.subr.bf16.mxu0 %v1143_v0 }
  0x36   :  { %1025 = vmatpush3.bf16.msra.mxu1 %v1024_v7  ;;  %1097 = vmatpush3.bf16.msra.mxu0 %v1096_v44 }
  0x37   :  { %1026 = vmatprep.subr.bf16.mxu1 %v1143_v0  ;;  %1098 = vmatprep.subr.bf16.mxu0 %v1143_v0 }
  0x3a   :  { %1028 = vmatpush3.bf16.msra.mxu1 %v1027_v16  ;;  %1100 = vmatpush3.bf16.msra.mxu0 %v1099_v14 }
  0x3b   :  { %1029 = vmatprep.subr.bf16.mxu1 %v1143_v0  ;;  %1101 = vmatprep.subr.bf16.mxu0 %v1143_v0 }
  0x3e   :  { %1031 = vmatpush3.bf16.msra.mxu1 %v1030_v24  ;;  %1103 = vmatpush3.bf16.msra.mxu0 %v1102_v25 }
  0x3f   :  { %1032 = vmatprep.subr.bf16.mxu1 %v1143_v0  ;;  %1104 = vmatprep.subr.bf16.mxu0 %v1143_v0 }
  0x42   :  { %1034 = vmatpush3.bf16.msra.mxu1 %v1033_v27  ;;  %1106 = vmatpush3.bf16.msra.mxu0 %v1105_v33 }
  0x43   :  { %1035 = vmatprep.subr.bf16.mxu1 %v1143_v0  ;;  %1107 = vmatprep.subr.bf16.mxu0 %v1143_v0 }
  0x45   :  { %845 = vmatmul.mubr.f32.vlgmr.msra.gmra.mrb[0].mxu1 %v1238_v30  ;;  %950 = vmatmul.mubr.f32.vlgmr.msra.gmra.mrb[0].mxu0 %v1238_v30 }
  0x46   :  { %1037 = vmatpush3.bf16.msra.mxu1 %v1036_v46  ;;  %1109 = vmatpush3.bf16.msra.mxu0 %v1185_v12  ;;  %v1045_v12 = vpack.c.bf16 %v1314_v58, %v1312_v57 }
  0x47   :  { %1038 = vmatprep.subr.bf16.mxu1 %v1143_v0  ;;  %1110 = vmatprep.subr.bf16.mxu0 %v1143_v0 }
  0x48   :  { %879 = vmatprep.mubr.msk.f32.mxu1 %vm1144_vm0, %v1145_v8  ;;  %984 = vmatprep.mubr.msk.f32.mxu0 %vm1144_vm0, %v1145_v8  ;;  %v1048_v8 = vpack.c.bf16 %v1335_v5, %v1332_v4 }
  0x4a   :  { %1040 = vmatpush3.bf16.msra.mxu1 %v1039_v51  ;;  %1112 = vmatpush3.bf16.msra.mxu0 %v1189_v13  ;;  %v1051_v13 = vpack.c.bf16 %v1353_v20, %v1348_v19 }
  0x4b   :  { %1041 = vmatprep.subr.bf16.mxu1 %v1143_v0  ;;  %1113 = vmatprep.subr.bf16.mxu0 %v1143_v0 }
  0x4e   :  { %1043 = vmatpush3.bf16.msra.mxu1 %v1042_v29  ;;  %1115 = vmatpush3.bf16.msra.mxu0 %v1201_v18  ;;  %v1054_v18 = vpack.c.bf16 %v1369_v34, %v1364_v28 }
  0x4f   :  { %1044 = vmatprep.subr.bf16.mxu1 %v1143_v0  ;;  %1116 = vmatprep.subr.bf16.mxu0 %v1143_v0 }
  0x52   :  { %1046 = vmatpush3.bf16.msra.mxu1 %v1045_v12  ;;  %1118 = vmatpush3.bf16.msra.mxu0 %v1217_v23  ;;  %v1057_v23 = vpack.c.bf16 %v1389_v56, %v1384_v42 }
  0x53   :  { %1047 = vmatprep.subr.bf16.mxu1 %v1143_v0  ;;  %1119 = vmatprep.subr.bf16.mxu0 %v1143_v0 }
  0x56   :  { %1049 = vmatpush3.bf16.msra.mxu1 %v1048_v8  ;;  %1121 = vmatpush3.bf16.msra.mxu0 %v1244_v32 }
  0x57   :  { %1050 = vmatprep.subr.bf16.mxu1 %v1143_v0  ;;  %1122 = vmatprep.subr.bf16.mxu0 %v1143_v0 }
  0x5a   :  { %1052 = vmatpush3.bf16.msra.mxu1 %v1051_v13  ;;  %1124 = vmatpush3.bf16.msra.mxu0 %v1274_v41 }
  0x5b   :  { %1053 = vmatprep.subr.bf16.mxu1 %v1143_v0  ;;  %1125 = vmatprep.subr.bf16.mxu0 %v1143_v0 }
  0x5e   :  { %1055 = vmatpush3.bf16.msra.mxu1 %v1054_v18  ;;  %1127 = vmatpush3.bf16.msra.mxu0 %v1305_v53 }
  0x5f   :  { %1056 = vmatprep.subr.bf16.mxu1 %v1143_v0  ;;  %1128 = vmatprep.subr.bf16.mxu0 %v1143_v0 }
  0x62   :  { %1058 = vmatpush3.bf16.msra.mxu1 %v1057_v23  ;;  %1130 = vmatpush3.bf16.msra.mxu0 %v1326_v63 }
  0x65   :  { %880 = vmatmul.mubr.f32.vlgmr.msra.gmra.mrb[0].mxu1 %v1266_v40  ;;  %985 = vmatmul.mubr.f32.vlgmr.msra.gmra.mrb[0].mxu0 %v1238_v30 }
 0x138   :  { %v370_v31 = vpop.f32.mrb[0].mxu1  ;;  %v665_v32 = vpop.f32.mrb[0].mxu0 }
 0x139   :  { %v1131_v37 = vadd.f32 %v665_v32, %v370_v31  ;;  %v881_v38 = vpop.f32.mrb[1].mxu1  ;;  %v986_v41 = vpop.f32.mrb[1].mxu0 }
 0x13b   :  { %670 = vst.msk [vmem:[%s1464_s2] sm:$0xf] %vm669_vm1, %v1131_v37 }

</bundles_post_ra>
